<compile_context>
chip_gen: v5e
topology: v5e:2x2
jax: 0.10.0
libtpu: 0.0.40
codegen_flags: <defaults>
</compile_context>

<pallas_src>
import numpy as np
import jax
import jax.numpy as jnp
from jax import lax
from jax.experimental import pallas as pl
from jax.experimental.pallas import tpu as pltpu


def _ceil_to(x, m):
    return ((x + m - 1) // m) * m


# ----------------------------- shared in-kernel helpers -----------------------------

def _hi_lo(a):
    """Split an f32 array into two bf16 parts (hi + lo ~ a) for f32-faithful MXU passes."""
    hi = a.astype(jnp.bfloat16)
    lo = (a - hi.astype(jnp.float32)).astype(jnp.bfloat16)
    return hi, lo


def _edge_to_logdomain(m1):
    """tanh/log front half of the check-node (target_to_source) update."""
    t = jnp.tanh(jnp.clip(m1, -10.0, 10.0) * 0.5)
    coeff = jnp.where(t < 0.0, 1.0, 0.0)
    # original clamps |t| to [1e-7, 1e10]; |t| <= 1 so the upper clip is dead -> dropped
    la = jnp.log(jnp.maximum(jnp.abs(t), 1e-7))
    return la, coeff


def _check_update(sla, sco):
    """Back half of the check-node update given extrinsic log|tanh| sum and sign count."""
    # cos(pi * integer_count) == +/-1, computed as an exact parity (no EUP cos)
    c2 = 1.0 - 2.0 * (sco - 2.0 * jnp.floor(sco * 0.5))
    o = jnp.clip(jnp.exp(sla) * c2, -1.0 + 1e-7, 1.0 - 1e-7)
    # log((1+o)/(1-o)); o is clipped so 1-o >= 1e-7 and the approx EUP reciprocal is safe
    return jnp.log((1.0 + o) * pl.reciprocal(1.0 - o, approx=True))


# ----------------------------- kernel: Gram-matrix formulation -----------------------------

def make_bp_kernel_gram(Nc):
    """Nc full BP iterations + marginalization.  Extrinsic scatter+gather folded into
    precomputed edge-adjacency Gram matrices (Gv_ext, Gc_ext); batch folded into M."""

    def bp_kernel(x_ref, av_ref, gv_ref, gc_ref, out_ref):
        x = x_ref[...]            # (BM, n_pad) f32 node LLRs for this batch tile
        av = av_ref[...]          # (e_pad, n_pad) bf16 one-hot of edge_index[0] (variable node)
        gv = gv_ref[...]          # (e_pad, e_pad) bf16 Av@Av^T - I  ({0,1}, symmetric)
        gc = gc_ref[...]          # (e_pad, e_pad) bf16 Ac@Ac^T - I  ({0,1}, symmetric)
        bm = x.shape[0]
        e_pad = gv.shape[0]

        # per-edge channel LLRs xg = x[edge_index[0]] = x @ Av^T  (hi/lo stacked, once per tile)
        x_hi, x_lo = _hi_lo(x)
        xg2 = lax.dot_general(jnp.concatenate([x_hi, x_lo], axis=0), av,
                              (((1,), (1,)), ((), ())),
                              preferred_element_type=jnp.float32)
        xg = xg2[:bm] + xg2[bm:]                     # (BM, e_pad)

        def one_iter(_, m):
            # ---- ggc1: variable -> check, extrinsic: m1 = m @ (Av Av^T - I) + x[edge0] ----
            m_hi, m_lo = _hi_lo(m)
            mv = jnp.dot(jnp.concatenate([m_hi, m_lo], axis=0), gv,
                         preferred_element_type=jnp.float32)
            m1 = mv[:bm] + mv[bm:] + xg
            # ---- ggc2: check -> variable (log-tanh magnitudes + sign parity) ----
            la, coeff = _edge_to_logdomain(m1)
            la_hi, la_lo = _hi_lo(la)
            # stack [la_hi; la_lo; coeff] so one MXU issue does both extrinsic sums
            g = jnp.dot(jnp.concatenate([la_hi, la_lo, coeff.astype(jnp.bfloat16)], axis=0),
                        gc, preferred_element_type=jnp.float32)
            return _check_update(g[:bm] + g[bm:2 * bm], g[2 * bm:])

        m = lax.fori_loop(0, Nc, one_iter, jnp.zeros((bm, e_pad), jnp.float32))

        # final marginals: res = scatter_add(m, edge_index[0]) + x ; out = clamp(sigmoid(-res))
        m_hi, m_lo = _hi_lo(m)
        sm = jnp.dot(jnp.concatenate([m_hi, m_lo], axis=0), av,
                     preferred_element_type=jnp.float32)
        res = jnp.clip(sm[:bm] + sm[bm:] + x, -30.0, 30.0)
        out_ref[...] = jnp.clip(pl.reciprocal(1.0 + jnp.exp(res), approx=True),
                                1e-7, 1.0 - 1e-7)

    return bp_kernel


# ----------------------------- kernel: stacked scatter/gather fallback -----------------------------

def make_bp_kernel_sg(Nc):
    """Fallback for dense codes (e_pad > 2*n_pad): explicit scatter/gather against the
    incidence matrices, with host-pretransposed copies (no in-loop XLU transposes) and
    shared-RHS operands stacked along M."""

    def bp_kernel(x_ref, av_ref, avt_ref, ac_ref, act_ref, out_ref):
        x = x_ref[...]                       # (BM, n_pad) f32
        av, avt = av_ref[...], avt_ref[...]  # (e_pad, n_pad) / (n_pad, e_pad) bf16
        ac, act = ac_ref[...], act_ref[...]  # (e_pad, n_pad) / (n_pad, e_pad) bf16
        bm = x.shape[0]
        e_pad = av.shape[0]

        def one_iter(_, m):
            # ---- ggc1: scatter over edge_index[0], gather back, extrinsic, + LLR ----
            m_hi, m_lo = _hi_lo(m)
            s2 = jnp.dot(jnp.concatenate([m_hi, m_lo], axis=0), av,
                         preferred_element_type=jnp.float32)
            s = s2[:bm] + s2[bm:] + x
            s_hi, s_lo = _hi_lo(s)
            g2 = jnp.dot(jnp.concatenate([s_hi, s_lo], axis=0), avt,
                         preferred_element_type=jnp.float32)
            m1 = g2[:bm] + g2[bm:] - m
            # ---- ggc2: check -> variable ----
            la, coeff = _edge_to_logdomain(m1)
            la_hi, la_lo = _hi_lo(la)
            sc = jnp.dot(jnp.concatenate([la_hi, la_lo, coeff.astype(jnp.bfloat16)], axis=0),
                         ac, preferred_element_type=jnp.float32)
            nla = sc[:bm] + sc[bm:2 * bm]
            nco = sc[2 * bm:]                 # integer check sign counts (bf16-exact for degree < 256)
            nla_hi, nla_lo = _hi_lo(nla)
            ga = jnp.dot(jnp.concatenate([nla_hi, nla_lo, nco.astype(jnp.bfloat16)], axis=0),
                         act, preferred_element_type=jnp.float32)
            sla = ga[:bm] + ga[bm:2 * bm] - la
            sco = ga[2 * bm:] - coeff
            return _check_update(sla, sco)

        m = lax.fori_loop(0, Nc, one_iter, jnp.zeros((bm, e_pad), jnp.float32))

        m_hi, m_lo = _hi_lo(m)
        sm = jnp.dot(jnp.concatenate([m_hi, m_lo], axis=0), av,
                     preferred_element_type=jnp.float32)
        res = jnp.clip(sm[:bm] + sm[bm:] + x, -30.0, 30.0)
        out_ref[...] = jnp.clip(pl.reciprocal(1.0 + jnp.exp(res), approx=True),
                                1e-7, 1.0 - 1e-7)

    return bp_kernel


# ----------------------------- chip / resource heuristics -----------------------------

def _tensorcores_per_device():
    """Best-effort count of TensorCores behind one addressable device (v7x / megacore)."""
    try:
        kind = jax.devices()[0].device_kind.lower()
    except Exception:
        return 1
    if ("v7" in kind) or ("7x" in kind) or ("v4" in kind) or ("v5p" in kind):
        return 2
    return 1


def _vmem_capacity_bytes():
    try:
        return int(pltpu.get_tpu_info().vmem_capacity_bytes)
    except Exception:
        pass
    try:
        kind = jax.devices()[0].device_kind.lower()
    except Exception:
        kind = ""
    if ("v7" in kind) or ("7x" in kind):
        return 64 * 1024 * 1024
    return 128 * 1024 * 1024


def _estimate_vmem_bytes(bm, e_pad, n_pad, use_gram):
    """Rough per-grid-step VMEM footprint (constants single-buffered, I/O double-buffered,
    generous bound on loop temporaries) used only to pick the batch tile size."""
    if use_gram:
        const = 2 * (e_pad * n_pad + 2 * e_pad * e_pad)
    else:
        const = 2 * (2 * e_pad * n_pad + 2 * n_pad * e_pad)
    io = 2 * 2 * bm * n_pad * 4
    tmp = 16 * bm * e_pad * 4 + 6 * bm * n_pad * 4
    return const + io + tmp


# ----------------------------- wrapper -----------------------------

def gnni_forward(x_col, edge_var, edge_chk, rows, cols, batch, Nc):
    """Pallas wrapper reproducing GNNI.forward for a batch of identical Tanner graphs.

    x_col    : (batch*(rows+cols), 1) f32 node LLRs (data.x), nodes grouped per batch element
    edge_var : (e_per,) int, per-graph variable-node id of each edge (edge_index[0], local)
    edge_chk : (e_per,) int, per-graph check-node id of each edge (edge_index[1]+rows, local)
    """
    n_per = rows + cols
    e_per = int(edge_var.shape[0])

    # pad graph dims to lane tiles (128) so all matmul operands are lane-dense
    n_pad = _ceil_to(n_per, 128)
    e_pad = _ceil_to(e_per, 128)

    ev = np.asarray(edge_var, np.int64)
    ec = np.asarray(edge_chk, np.int64)
    av_np = np.zeros((e_pad, n_pad), np.float32)
    ac_np = np.zeros((e_pad, n_pad), np.float32)
    av_np[np.arange(e_per), ev] = 1.0
    ac_np[np.arange(e_per), ec] = 1.0

    n_tc = _tensorcores_per_device()
    vmem_cap = _vmem_capacity_bytes()
    vmem_limit = min(int(vmem_cap * 0.78), 100 * 1024 * 1024)

    # Gram formulation halves MXU issues and drops node-level temporaries, but costs
    # 2*e_pad^2 bf16 of constants; only use it while edge count / footprint stay moderate.
    use_gram = (e_pad <= 2 * n_pad) and (4 * e_pad * e_pad <= vmem_limit // 2)

    # batch-tile selection: >=2 "parallel" tiles when more than one TensorCore can work,
    # one large tile on single-TC parts (grid steps are a serial loop there).
    b_min = _ceil_to(batch, 8)
    n_tiles = n_tc if (n_tc > 1 and b_min >= 8 * n_tc) else 1
    bm = _ceil_to(pl.cdiv(b_min, n_tiles), 8)
    while bm > 8 and _estimate_vmem_bytes(bm, e_pad, n_pad, use_gram) > vmem_limit:
        n_tiles += 1
        bm = _ceil_to(pl.cdiv(b_min, n_tiles), 8)
    b_pad = bm * n_tiles

    x = jnp.asarray(x_col, jnp.float32).reshape(batch, n_per)
    x_pad = jnp.zeros((b_pad, n_pad), jnp.float32).at[:batch, :n_per].set(x)

    av = jnp.asarray(av_np, jnp.bfloat16)
    if use_gram:
        idx = np.arange(e_per)
        gv_np = av_np @ av_np.T           # {0,1}: edges sharing the same variable node
        gc_np = ac_np @ ac_np.T           # {0,1}: edges sharing the same check node
        gv_np[idx, idx] -= 1.0            # extrinsic: drop self edge (padded rows stay all-zero)
        gc_np[idx, idx] -= 1.0
        consts = (av,
                  jnp.asarray(gv_np, jnp.bfloat16),
                  jnp.asarray(gc_np, jnp.bfloat16))
        kernel = make_bp_kernel_gram(Nc)
    else:
        consts = (av,
                  jnp.asarray(av_np.T, jnp.bfloat16),
                  jnp.asarray(ac_np, jnp.bfloat16),
                  jnp.asarray(ac_np.T, jnp.bfloat16))
        kernel = make_bp_kernel_sg(Nc)

    def _run(single_buffer_consts):
        const_specs = []
        for c in consts:
            if single_buffer_consts:
                # grid-invariant constants: fetched once, single-buffered -> half the VMEM
                const_specs.append(pl.BlockSpec(c.shape, lambda i: (0, 0),
                                                pipeline_mode=pl.Buffered(1)))
            else:
                const_specs.append(pl.BlockSpec(c.shape, lambda i: (0, 0)))
        return pl.pallas_call(
            kernel,
            out_shape=jax.ShapeDtypeStruct((b_pad, n_pad), jnp.float32),
            grid=(n_tiles,),
            in_specs=[pl.BlockSpec((bm, n_pad), lambda i: (i, 0))] + const_specs,
            out_specs=pl.BlockSpec((bm, n_pad), lambda i: (i, 0)),
            compiler_params=pltpu.CompilerParams(
                dimension_semantics=("parallel",),
                vmem_limit_bytes=vmem_limit,
            ),
        )(x_pad, *consts)

    try:
        out_all = jax.block_until_ready(_run(True))
    except Exception:
        # fallback for jax builds without pl.Buffered(1) single-buffering support
        out_all = jax.block_until_ready(_run(False))

    # keep the first `rows` entries (variable nodes) of every (rows+cols) block
    return out_all[:batch, :rows].reshape(batch * rows, 1)


# ----------------------------- pure-JAX reference -----------------------------

def reference_bp(x_col, edge0, edge1, N, Nc):
    """Pure-JAX reference (exact f32 segment_sum scatter/gather) for validation."""
    x = x_col[:, 0].astype(jnp.float32)
    E = edge0.shape[0]
    m = jnp.zeros((E,), jnp.float32)
    for _ in range(Nc):
        s = jax.ops.segment_sum(m, edge0, num_segments=N)
        m = s[edge0] - m + x[edge0]
        t = jnp.clip(m, -10.0, 10.0)
        t = jnp.tanh(t * 0.5)
        coeff = jnp.where(t < 0.0, 1.0, 0.0).astype(jnp.float32)
        a = jnp.clip(jnp.abs(t), 1e-7, 1e10)
        la = jnp.log(a)
        sla = jax.ops.segment_sum(la, edge1, num_segments=N)[edge1] - la
        sco = jax.ops.segment_sum(coeff, edge1, num_segments=N)[edge1] - coeff
        c2 = jnp.cos(jnp.pi * sco)
        o = jnp.clip(jnp.exp(sla) * c2, -1.0 + 1e-7, 1.0 - 1e-7)
        m = jnp.log((1.0 + o) / (1.0 - o))
    res = jax.ops.segment_sum(m, edge0, num_segments=N) + x
    return jnp.clip(1.0 / (1.0 + jnp.exp(res)), 1e-7, 1.0 - 1e-7)


if __name__ == "__main__":
    # small synthetic Tanner graph (original file: BATCH_SIZE=120, Nc=25; scaled down here)
    rows, cols, batch, Nc = 8, 4, 2, 5

    # deterministic parity-check matrix H (cols checks x rows variables)
    H = np.array(
        [[1, 1, 1, 1, 0, 0, 0, 0],
         [0, 0, 1, 1, 1, 1, 0, 0],
         [0, 0, 0, 0, 1, 1, 1, 1],
         [1, 1, 0, 0, 0, 0, 1, 1]], dtype=np.int32)
    chk, var = np.nonzero(H)
    edge_var = var.astype(np.int32)             # per-graph edge_index[0] (variable endpoint)
    edge_chk = (rows + chk).astype(np.int32)    # per-graph edge_index[1] + rows (check endpoint)

    n_per = rows + cols
    N = n_per * batch
    key = jax.random.PRNGKey(0)
    x_col = 2.0 * jax.random.normal(key, (N, 1), dtype=jnp.float32)   # node LLRs (data.x)

    out = gnni_forward(x_col, edge_var, edge_chk, rows, cols, batch, Nc)
    out = jax.block_until_ready(out)

    # validate against the pure-JAX reference on the equivalent batched (global) edge list
    e0 = np.concatenate([b * n_per + edge_var for b in range(batch)])
    e1 = np.concatenate([b * n_per + edge_chk for b in range(batch)])
    ref_all = reference_bp(x_col, jnp.asarray(e0, jnp.int32), jnp.asarray(e1, jnp.int32), N, Nc)
    ref = ref_all.reshape(batch, n_per)[:, :rows].reshape(batch * rows, 1)

    assert out.shape == (batch * rows, 1)
    assert bool(jnp.all(jnp.isfinite(out)))
    # kernel uses native bf16 MXU passes (hi/lo splits) + approx EUP reciprocals vs exact f32 reference
    np.testing.assert_allclose(np.asarray(out), np.asarray(ref), rtol=5e-2, atol=1e-2)

    print("KERNEL_OK")
</pallas_src>

<mosaic_0001>
module attributes {stable_mosaic.version = 11 : i64} {
  func.func @bp_kernel(%arg0: i32, %arg1: memref<8x128xf32, #tpu.memory_space<vmem>>, %arg2: memref<128x128xbf16, #tpu.memory_space<vmem>>, %arg3: memref<128x128xbf16, #tpu.memory_space<vmem>>, %arg4: memref<128x128xbf16, #tpu.memory_space<vmem>>, %arg5: memref<8x128xf32, #tpu.memory_space<vmem>>) attributes {dimension_semantics = [#tpu.dimension_semantics<parallel>], iteration_bounds = array<i64: 1>, scalar_prefetch = 0 : i64, scratch_operands = 0 : i64, tpu.core_type = #tpu.core_type<tc>, window_params = [{transform_indices = @transform_0, window_bounds = array<i64: 8, 128>}, {pipeline_mode = #tpu.pipeline_mode<synchronous>, transform_indices = @transform_1, window_bounds = array<i64: 128, 128>}, {pipeline_mode = #tpu.pipeline_mode<synchronous>, transform_indices = @transform_2, window_bounds = array<i64: 128, 128>}, {pipeline_mode = #tpu.pipeline_mode<synchronous>, transform_indices = @transform_3, window_bounds = array<i64: 128, 128>}, {transform_indices = @transform_4, window_bounds = array<i64: 8, 128>}]} {
    %c0 = arith.constant 0 : index
    %c0_0 = arith.constant 0 : index
    %0 = vector.load %arg1[%c0, %c0_0] : memref<8x128xf32, #tpu.memory_space<vmem>>, vector<8x128xf32>
    %c0_1 = arith.constant 0 : index
    %c0_2 = arith.constant 0 : index
    %1 = vector.load %arg2[%c0_1, %c0_2] : memref<128x128xbf16, #tpu.memory_space<vmem>>, vector<128x128xbf16>
    %c0_3 = arith.constant 0 : index
    %c0_4 = arith.constant 0 : index
    %2 = vector.load %arg3[%c0_3, %c0_4] : memref<128x128xbf16, #tpu.memory_space<vmem>>, vector<128x128xbf16>
    %c0_5 = arith.constant 0 : index
    %c0_6 = arith.constant 0 : index
    %3 = vector.load %arg4[%c0_5, %c0_6] : memref<128x128xbf16, #tpu.memory_space<vmem>>, vector<128x128xbf16>
    %4 = arith.truncf %0 : vector<8x128xf32> to vector<8x128xbf16>
    %5 = arith.extf %4 : vector<8x128xbf16> to vector<8x128xf32>
    %6 = arith.subf %0, %5 : vector<8x128xf32>
    %7 = arith.truncf %6 : vector<8x128xf32> to vector<8x128xbf16>
    %8 = tpu.concatenate %4, %7 in 0 : vector<8x128xbf16>, vector<8x128xbf16> -> vector<16x128xbf16>
    %cst = arith.constant dense<0.000000e+00> : vector<16x128xf32>
    %9 = tpu.matmul %8, %1, %cst {dimension_numbers = #tpu.dot_dimension_numbers<[1], [1], [0], [0], [0, 0, 1, 0], [], []>} : vector<16x128xbf16>, vector<128x128xbf16>, vector<16x128xf32> -> vector<16x128xf32>
    %10 = vector.extract_strided_slice %9 {offsets = [0, 0], sizes = [8, 128], strides = [1, 1]} : vector<16x128xf32> to vector<8x128xf32>
    %11 = vector.extract_strided_slice %9 {offsets = [8, 0], sizes = [8, 128], strides = [1, 1]} : vector<16x128xf32> to vector<8x128xf32>
    %12 = arith.addf %10, %11 : vector<8x128xf32>
    %cst_7 = arith.constant 0.000000e+00 : f32
    %13 = vector.broadcast %cst_7 : f32 to vector<8x128xf32>
    %c0_i32 = arith.constant 0 : i32
    %c5_i32 = arith.constant 5 : i32
    %14 = arith.addi %c0_i32, %c5_i32 : i32
    %c1_i32 = arith.constant 1 : i32
    %15 = scf.for %arg6 = %c0_i32 to %14 step %c1_i32 iter_args(%arg7 = %13) -> (vector<8x128xf32>)  : i32 {
      %39 = arith.truncf %arg7 : vector<8x128xf32> to vector<8x128xbf16>
      %40 = arith.extf %39 : vector<8x128xbf16> to vector<8x128xf32>
      %41 = arith.subf %arg7, %40 : vector<8x128xf32>
      %42 = arith.truncf %41 : vector<8x128xf32> to vector<8x128xbf16>
      %43 = tpu.concatenate %39, %42 in 0 : vector<8x128xbf16>, vector<8x128xbf16> -> vector<16x128xbf16>
      %cst_16 = arith.constant dense<0.000000e+00> : vector<16x128xf32>
      %44 = tpu.matmul %43, %2, %cst_16 {dimension_numbers = #tpu.dot_dimension_numbers<[1], [0], [0], [1], [0, 0, 1, 1], [], []>} : vector<16x128xbf16>, vector<128x128xbf16>, vector<16x128xf32> -> vector<16x128xf32>
      %45 = vector.extract_strided_slice %44 {offsets = [0, 0], sizes = [8, 128], strides = [1, 1]} : vector<16x128xf32> to vector<8x128xf32>
      %46 = vector.extract_strided_slice %44 {offsets = [8, 0], sizes = [8, 128], strides = [1, 1]} : vector<16x128xf32> to vector<8x128xf32>
      %47 = arith.addf %45, %46 : vector<8x128xf32>
      %48 = arith.addf %47, %12 : vector<8x128xf32>
      %cst_17 = arith.constant -1.000000e+01 : f32
      %cst_18 = arith.constant 1.000000e+01 : f32
      %49 = vector.broadcast %cst_17 : f32 to vector<8x128xf32>
      %50 = arith.maximumf %49, %48 : vector<8x128xf32>
      %51 = vector.broadcast %cst_18 : f32 to vector<8x128xf32>
      %52 = arith.minimumf %51, %50 : vector<8x128xf32>
      %cst_19 = arith.constant 5.000000e-01 : f32
      %53 = vector.broadcast %cst_19 : f32 to vector<8x128xf32>
      %54 = arith.mulf %52, %53 : vector<8x128xf32>
      %55 = math.tanh %54 : vector<8x128xf32>
      %cst_20 = arith.constant 0.000000e+00 : f32
      %56 = vector.broadcast %cst_20 : f32 to vector<8x128xf32>
      %57 = arith.cmpf olt, %55, %56 : vector<8x128xf32>
      %cst_21 = arith.constant 1.000000e+00 : f32
      %cst_22 = arith.constant 0.000000e+00 : f32
      %58 = vector.broadcast %cst_21 : f32 to vector<8x128xf32>
      %59 = vector.broadcast %cst_22 : f32 to vector<8x128xf32>
      %60 = arith.select %57, %58, %59 : vector<8x128xi1>, vector<8x128xf32>
      %61 = math.absf %55 : vector<8x128xf32>
      %cst_23 = arith.constant 1.000000e-07 : f32
      %62 = vector.broadcast %cst_23 : f32 to vector<8x128xf32>
      %63 = arith.maximumf %61, %62 : vector<8x128xf32>
      %64 = math.log %63 : vector<8x128xf32>
      %65 = arith.truncf %64 : vector<8x128xf32> to vector<8x128xbf16>
      %66 = arith.extf %65 : vector<8x128xbf16> to vector<8x128xf32>
      %67 = arith.subf %64, %66 : vector<8x128xf32>
      %68 = arith.truncf %67 : vector<8x128xf32> to vector<8x128xbf16>
      %69 = arith.truncf %60 : vector<8x128xf32> to vector<8x128xbf16>
      %70 = tpu.concatenate %65, %68, %69 in 0 : vector<8x128xbf16>, vector<8x128xbf16>, vector<8x128xbf16> -> vector<24x128xbf16>
      %cst_24 = arith.constant dense<0.000000e+00> : vector<24x128xf32>
      %71 = tpu.matmul %70, %3, %cst_24 {dimension_numbers = #tpu.dot_dimension_numbers<[1], [0], [0], [1], [0, 0, 1, 1], [], []>} : vector<24x128xbf16>, vector<128x128xbf16>, vector<24x128xf32> -> vector<24x128xf32>
      %72 = vector.extract_strided_slice %71 {offsets = [0, 0], sizes = [8, 128], strides = [1, 1]} : vector<24x128xf32> to vector<8x128xf32>
      %73 = vector.extract_strided_slice %71 {offsets = [8, 0], sizes = [8, 128], strides = [1, 1]} : vector<24x128xf32> to vector<8x128xf32>
      %74 = arith.addf %72, %73 : vector<8x128xf32>
      %75 = vector.extract_strided_slice %71 {offsets = [16, 0], sizes = [8, 128], strides = [1, 1]} : vector<24x128xf32> to vector<8x128xf32>
      %cst_25 = arith.constant 5.000000e-01 : f32
      %76 = vector.broadcast %cst_25 : f32 to vector<8x128xf32>
      %77 = arith.mulf %75, %76 : vector<8x128xf32>
      %78 = math.floor %77 : vector<8x128xf32>
      %cst_26 = arith.constant 2.000000e+00 : f32
      %79 = vector.broadcast %cst_26 : f32 to vector<8x128xf32>
      %80 = arith.mulf %79, %78 : vector<8x128xf32>
      %81 = arith.subf %75, %80 : vector<8x128xf32>
      %cst_27 = arith.constant 2.000000e+00 : f32
      %82 = vector.broadcast %cst_27 : f32 to vector<8x128xf32>
      %83 = arith.mulf %82, %81 : vector<8x128xf32>
      %cst_28 = arith.constant 1.000000e+00 : f32
      %84 = vector.broadcast %cst_28 : f32 to vector<8x128xf32>
      %85 = arith.subf %84, %83 : vector<8x128xf32>
      %86 = math.exp %74 : vector<8x128xf32>
      %87 = arith.mulf %86, %85 : vector<8x128xf32>
      %cst_29 = arith.constant -0.99999988 : f32
      %cst_30 = arith.constant 0.99999988 : f32
      %88 = vector.broadcast %cst_29 : f32 to vector<8x128xf32>
      %89 = arith.maximumf %88, %87 : vector<8x128xf32>
      %90 = vector.broadcast %cst_30 : f32 to vector<8x128xf32>
      %91 = arith.minimumf %90, %89 : vector<8x128xf32>
      %cst_31 = arith.constant 1.000000e+00 : f32
      %92 = vector.broadcast %cst_31 : f32 to vector<8x128xf32>
      %93 = arith.addf %92, %91 : vector<8x128xf32>
      %cst_32 = arith.constant 1.000000e+00 : f32
      %94 = vector.broadcast %cst_32 : f32 to vector<8x128xf32>
      %95 = arith.subf %94, %91 : vector<8x128xf32>
      %96 = tpu.reciprocal %95 {approx = true} : vector<8x128xf32> -> vector<8x128xf32>
      %97 = arith.mulf %93, %96 : vector<8x128xf32>
      %98 = math.log %97 : vector<8x128xf32>
      scf.yield %98 : vector<8x128xf32>
    }
    %16 = arith.truncf %15 : vector<8x128xf32> to vector<8x128xbf16>
    %17 = arith.extf %16 : vector<8x128xbf16> to vector<8x128xf32>
    %18 = arith.subf %15, %17 : vector<8x128xf32>
    %19 = arith.truncf %18 : vector<8x128xf32> to vector<8x128xbf16>
    %20 = tpu.concatenate %16, %19 in 0 : vector<8x128xbf16>, vector<8x128xbf16> -> vector<16x128xbf16>
    %cst_8 = arith.constant dense<0.000000e+00> : vector<16x128xf32>
    %21 = tpu.matmul %20, %1, %cst_8 {dimension_numbers = #tpu.dot_dimension_numbers<[1], [0], [0], [1], [0, 0, 1, 1], [], []>} : vector<16x128xbf16>, vector<128x128xbf16>, vector<16x128xf32> -> vector<16x128xf32>
    %22 = vector.extract_strided_slice %21 {offsets = [0, 0], sizes = [8, 128], strides = [1, 1]} : vector<16x128xf32> to vector<8x128xf32>
    %23 = vector.extract_strided_slice %21 {offsets = [8, 0], sizes = [8, 128], strides = [1, 1]} : vector<16x128xf32> to vector<8x128xf32>
    %24 = arith.addf %22, %23 : vector<8x128xf32>
    %25 = arith.addf %24, %0 : vector<8x128xf32>
    %cst_9 = arith.constant -3.000000e+01 : f32
    %cst_10 = arith.constant 3.000000e+01 : f32
    %26 = vector.broadcast %cst_9 : f32 to vector<8x128xf32>
    %27 = arith.maximumf %26, %25 : vector<8x128xf32>
    %28 = vector.broadcast %cst_10 : f32 to vector<8x128xf32>
    %29 = arith.minimumf %28, %27 : vector<8x128xf32>
    %30 = math.exp %29 : vector<8x128xf32>
    %cst_11 = arith.constant 1.000000e+00 : f32
    %31 = vector.broadcast %cst_11 : f32 to vector<8x128xf32>
    %32 = arith.addf %31, %30 : vector<8x128xf32>
    %33 = tpu.reciprocal %32 {approx = true} : vector<8x128xf32> -> vector<8x128xf32>
    %cst_12 = arith.constant 1.000000e-07 : f32
    %cst_13 = arith.constant 0.99999988 : f32
    %34 = vector.broadcast %cst_12 : f32 to vector<8x128xf32>
    %35 = arith.maximumf %34, %33 : vector<8x128xf32>
    %36 = vector.broadcast %cst_13 : f32 to vector<8x128xf32>
    %37 = arith.minimumf %36, %35 : vector<8x128xf32>
    %c0_14 = arith.constant 0 : index
    %c0_15 = arith.constant 0 : index
    %38 = vector.load %arg5[%c0_14, %c0_15] : memref<8x128xf32, #tpu.memory_space<vmem>>, vector<8x128xf32>
    tpu.vector_store %arg5[%c0_14, %c0_15], %37 {strides = array<i32>} : memref<8x128xf32, #tpu.memory_space<vmem>>, vector<8x128xf32>,
    return
  }
  func.func @transform_0(%arg0: i32) -> (i32, i32) {
    %c0_i32 = arith.constant 0 : i32
    %c0_i32_0 = arith.constant 0 : i32
    return %arg0, %c0_i32 : i32, i32
  }
  func.func @transform_1(%arg0: i32) -> (i32, i32) {
    %c0_i32 = arith.constant 0 : i32
    %c0_i32_0 = arith.constant 0 : i32
    %c0_i32_1 = arith.constant 0 : i32
    return %c0_i32, %c0_i32_0 : i32, i32
  }
  func.func @transform_2(%arg0: i32) -> (i32, i32) {
    %c0_i32 = arith.constant 0 : i32
    %c0_i32_0 = arith.constant 0 : i32
    %c0_i32_1 = arith.constant 0 : i32
    return %c0_i32, %c0_i32_0 : i32, i32
  }
  func.func @transform_3(%arg0: i32) -> (i32, i32) {
    %c0_i32 = arith.constant 0 : i32
    %c0_i32_0 = arith.constant 0 : i32
    %c0_i32_1 = arith.constant 0 : i32
    return %c0_i32, %c0_i32_0 : i32, i32
  }
  func.func @transform_4(%arg0: i32) -> (i32, i32) {
    %c0_i32 = arith.constant 0 : i32
    %c0_i32_0 = arith.constant 0 : i32
    return %arg0, %c0_i32 : i32, i32
  }
}

module attributes {stable_mosaic.version = 11 : i64} {
  func.func @bp_kernel(%arg0: i32, %arg1: memref<8x128xf32, #tpu.memory_space<vmem>>, %arg2: memref<128x128xbf16, #tpu.memory_space<vmem>>, %arg3: memref<128x128xbf16, #tpu.memory_space<vmem>>, %arg4: memref<128x128xbf16, #tpu.memory_space<vmem>>, %arg5: memref<8x128xf32, #tpu.memory_space<vmem>>) attributes {dimension_semantics = [#tpu.dimension_semantics<parallel>], iteration_bounds = array<i64: 1>, scalar_prefetch = 0 : i64, scratch_operands = 0 : i64, tpu.core_type = #tpu.core_type<tc>, window_params = [{transform_indices = @transform_0, window_bounds = array<i64: 8, 128>}, {pipeline_mode = #tpu.pipeline_mode<synchronous>, transform_indices = @transform_1, window_bounds = array<i64: 128, 128>}, {pipeline_mode = #tpu.pipeline_mode<synchronous>, transform_indices = @transform_2, window_bounds = array<i64: 128, 128>}, {pipeline_mode = #tpu.pipeline_mode<synchronous>, transform_indices = @transform_3, window_bounds = array<i64: 128, 128>}, {transform_indices = @transform_4, window_bounds = array<i64: 8, 128>}]} {
    %c0 = arith.constant 0 : index
    %c0_0 = arith.constant 0 : index
    %0 = vector.load %arg1[%c0, %c0_0] : memref<8x128xf32, #tpu.memory_space<vmem>>, vector<8x128xf32>
    %c0_1 = arith.constant 0 : index
    %c0_2 = arith.constant 0 : index
    %1 = vector.load %arg2[%c0_1, %c0_2] : memref<128x128xbf16, #tpu.memory_space<vmem>>, vector<128x128xbf16>
    %c0_3 = arith.constant 0 : index
    %c0_4 = arith.constant 0 : index
    %2 = vector.load %arg3[%c0_3, %c0_4] : memref<128x128xbf16, #tpu.memory_space<vmem>>, vector<128x128xbf16>
    %c0_5 = arith.constant 0 : index
    %c0_6 = arith.constant 0 : index
    %3 = vector.load %arg4[%c0_5, %c0_6] : memref<128x128xbf16, #tpu.memory_space<vmem>>, vector<128x128xbf16>
    %4 = arith.truncf %0 : vector<8x128xf32> to vector<8x128xbf16>
    %5 = arith.extf %4 : vector<8x128xbf16> to vector<8x128xf32>
    %6 = arith.subf %0, %5 : vector<8x128xf32>
    %7 = arith.truncf %6 : vector<8x128xf32> to vector<8x128xbf16>
    %8 = tpu.concatenate %4, %7 in 0 : vector<8x128xbf16>, vector<8x128xbf16> -> vector<16x128xbf16>
    %cst = arith.constant dense<0.000000e+00> : vector<16x128xf32>
    %9 = tpu.matmul %8, %1, %cst {dimension_numbers = #tpu.dot_dimension_numbers<[1], [1], [0], [0], [0, 0, 1, 0], [], []>} : vector<16x128xbf16>, vector<128x128xbf16>, vector<16x128xf32> -> vector<16x128xf32>
    %10 = vector.extract_strided_slice %9 {offsets = [0, 0], sizes = [8, 128], strides = [1, 1]} : vector<16x128xf32> to vector<8x128xf32>
    %11 = vector.extract_strided_slice %9 {offsets = [8, 0], sizes = [8, 128], strides = [1, 1]} : vector<16x128xf32> to vector<8x128xf32>
    %12 = arith.addf %10, %11 : vector<8x128xf32>
    %cst_7 = arith.constant 0.000000e+00 : f32
    %13 = vector.broadcast %cst_7 : f32 to vector<8x128xf32>
    %c0_i32 = arith.constant 0 : i32
    %c5_i32 = arith.constant 5 : i32
    %14 = arith.addi %c0_i32, %c5_i32 : i32
    %c1_i32 = arith.constant 1 : i32
    %15 = scf.for %arg6 = %c0_i32 to %14 step %c1_i32 iter_args(%arg7 = %13) -> (vector<8x128xf32>)  : i32 {
      %39 = arith.truncf %arg7 : vector<8x128xf32> to vector<8x128xbf16>
      %40 = arith.extf %39 : vector<8x128xbf16> to vector<8x128xf32>
      %41 = arith.subf %arg7, %40 : vector<8x128xf32>
      %42 = arith.truncf %41 : vector<8x128xf32> to vector<8x128xbf16>
      %43 = tpu.concatenate %39, %42 in 0 : vector<8x128xbf16>, vector<8x128xbf16> -> vector<16x128xbf16>
      %cst_16 = arith.constant dense<0.000000e+00> : vector<16x128xf32>
      %44 = tpu.matmul %43, %2, %cst_16 {dimension_numbers = #tpu.dot_dimension_numbers<[1], [0], [0], [1], [0, 0, 1, 1], [], []>} : vector<16x128xbf16>, vector<128x128xbf16>, vector<16x128xf32> -> vector<16x128xf32>
      %45 = vector.extract_strided_slice %44 {offsets = [0, 0], sizes = [8, 128], strides = [1, 1]} : vector<16x128xf32> to vector<8x128xf32>
      %46 = vector.extract_strided_slice %44 {offsets = [8, 0], sizes = [8, 128], strides = [1, 1]} : vector<16x128xf32> to vector<8x128xf32>
      %47 = arith.addf %45, %46 : vector<8x128xf32>
      %48 = arith.addf %47, %12 : vector<8x128xf32>
      %cst_17 = arith.constant -1.000000e+01 : f32
      %cst_18 = arith.constant 1.000000e+01 : f32
      %49 = vector.broadcast %cst_17 : f32 to vector<8x128xf32>
      %50 = arith.maximumf %49, %48 : vector<8x128xf32>
      %51 = vector.broadcast %cst_18 : f32 to vector<8x128xf32>
      %52 = arith.minimumf %51, %50 : vector<8x128xf32>
      %cst_19 = arith.constant 5.000000e-01 : f32
      %53 = vector.broadcast %cst_19 : f32 to vector<8x128xf32>
      %54 = arith.mulf %52, %53 : vector<8x128xf32>
      %55 = math.tanh %54 : vector<8x128xf32>
      %cst_20 = arith.constant 0.000000e+00 : f32
      %56 = vector.broadcast %cst_20 : f32 to vector<8x128xf32>
      %57 = arith.cmpf olt, %55, %56 : vector<8x128xf32>
      %cst_21 = arith.constant 1.000000e+00 : f32
      %cst_22 = arith.constant 0.000000e+00 : f32
      %58 = vector.broadcast %cst_21 : f32 to vector<8x128xf32>
      %59 = vector.broadcast %cst_22 : f32 to vector<8x128xf32>
      %60 = arith.select %57, %58, %59 : vector<8x128xi1>, vector<8x128xf32>
      %61 = math.absf %55 : vector<8x128xf32>
      %cst_23 = arith.constant 1.000000e-07 : f32
      %62 = vector.broadcast %cst_23 : f32 to vector<8x128xf32>
      %63 = arith.maximumf %61, %62 : vector<8x128xf32>
      %64 = math.log %63 : vector<8x128xf32>
      %65 = arith.truncf %64 : vector<8x128xf32> to vector<8x128xbf16>
      %66 = arith.extf %65 : vector<8x128xbf16> to vector<8x128xf32>
      %67 = arith.subf %64, %66 : vector<8x128xf32>
      %68 = arith.truncf %67 : vector<8x128xf32> to vector<8x128xbf16>
      %69 = arith.truncf %60 : vector<8x128xf32> to vector<8x128xbf16>
      %70 = tpu.concatenate %65, %68, %69 in 0 : vector<8x128xbf16>, vector<8x128xbf16>, vector<8x128xbf16> -> vector<24x128xbf16>
      %cst_24 = arith.constant dense<0.000000e+00> : vector<24x128xf32>
      %71 = tpu.matmul %70, %3, %cst_24 {dimension_numbers = #tpu.dot_dimension_numbers<[1], [0], [0], [1], [0, 0, 1, 1], [], []>} : vector<24x128xbf16>, vector<128x128xbf16>, vector<24x128xf32> -> vector<24x128xf32>
      %72 = vector.extract_strided_slice %71 {offsets = [0, 0], sizes = [8, 128], strides = [1, 1]} : vector<24x128xf32> to vector<8x128xf32>
      %73 = vector.extract_strided_slice %71 {offsets = [8, 0], sizes = [8, 128], strides = [1, 1]} : vector<24x128xf32> to vector<8x128xf32>
      %74 = arith.addf %72, %73 : vector<8x128xf32>
      %75 = vector.extract_strided_slice %71 {offsets = [16, 0], sizes = [8, 128], strides = [1, 1]} : vector<24x128xf32> to vector<8x128xf32>
      %cst_25 = arith.constant 5.000000e-01 : f32
      %76 = vector.broadcast %cst_25 : f32 to vector<8x128xf32>
      %77 = arith.mulf %75, %76 : vector<8x128xf32>
      %78 = math.floor %77 : vector<8x128xf32>
      %cst_26 = arith.constant 2.000000e+00 : f32
      %79 = vector.broadcast %cst_26 : f32 to vector<8x128xf32>
      %80 = arith.mulf %79, %78 : vector<8x128xf32>
      %81 = arith.subf %75, %80 : vector<8x128xf32>
      %cst_27 = arith.constant 2.000000e+00 : f32
      %82 = vector.broadcast %cst_27 : f32 to vector<8x128xf32>
      %83 = arith.mulf %82, %81 : vector<8x128xf32>
      %cst_28 = arith.constant 1.000000e+00 : f32
      %84 = vector.broadcast %cst_28 : f32 to vector<8x128xf32>
      %85 = arith.subf %84, %83 : vector<8x128xf32>
      %86 = math.exp %74 : vector<8x128xf32>
      %87 = arith.mulf %86, %85 : vector<8x128xf32>
      %cst_29 = arith.constant -0.99999988 : f32
      %cst_30 = arith.constant 0.99999988 : f32
      %88 = vector.broadcast %cst_29 : f32 to vector<8x128xf32>
      %89 = arith.maximumf %88, %87 : vector<8x128xf32>
      %90 = vector.broadcast %cst_30 : f32 to vector<8x128xf32>
      %91 = arith.minimumf %90, %89 : vector<8x128xf32>
      %cst_31 = arith.constant 1.000000e+00 : f32
      %92 = vector.broadcast %cst_31 : f32 to vector<8x128xf32>
      %93 = arith.addf %92, %91 : vector<8x128xf32>
      %cst_32 = arith.constant 1.000000e+00 : f32
      %94 = vector.broadcast %cst_32 : f32 to vector<8x128xf32>
      %95 = arith.subf %94, %91 : vector<8x128xf32>
      %96 = tpu.reciprocal %95 {approx = true} : vector<8x128xf32> -> vector<8x128xf32>
      %97 = arith.mulf %93, %96 : vector<8x128xf32>
      %98 = math.log %97 : vector<8x128xf32>
      scf.yield %98 : vector<8x128xf32>
    }
    %16 = arith.truncf %15 : vector<8x128xf32> to vector<8x128xbf16>
    %17 = arith.extf %16 : vector<8x128xbf16> to vector<8x128xf32>
    %18 = arith.subf %15, %17 : vector<8x128xf32>
    %19 = arith.truncf %18 : vector<8x128xf32> to vector<8x128xbf16>
    %20 = tpu.concatenate %16, %19 in 0 : vector<8x128xbf16>, vector<8x128xbf16> -> vector<16x128xbf16>
    %cst_8 = arith.constant dense<0.000000e+00> : vector<16x128xf32>
    %21 = tpu.matmul %20, %1, %cst_8 {dimension_numbers = #tpu.dot_dimension_numbers<[1], [0], [0], [1], [0, 0, 1, 1], [], []>} : vector<16x128xbf16>, vector<128x128xbf16>, vector<16x128xf32> -> vector<16x128xf32>
    %22 = vector.extract_strided_slice %21 {offsets = [0, 0], sizes = [8, 128], strides = [1, 1]} : vector<16x128xf32> to vector<8x128xf32>
    %23 = vector.extract_strided_slice %21 {offsets = [8, 0], sizes = [8, 128], strides = [1, 1]} : vector<16x128xf32> to vector<8x128xf32>
    %24 = arith.addf %22, %23 : vector<8x128xf32>
    %25 = arith.addf %24, %0 : vector<8x128xf32>
    %cst_9 = arith.constant -3.000000e+01 : f32
    %cst_10 = arith.constant 3.000000e+01 : f32
    %26 = vector.broadcast %cst_9 : f32 to vector<8x128xf32>
    %27 = arith.maximumf %26, %25 : vector<8x128xf32>
    %28 = vector.broadcast %cst_10 : f32 to vector<8x128xf32>
    %29 = arith.minimumf %28, %27 : vector<8x128xf32>
    %30 = math.exp %29 : vector<8x128xf32>
    %cst_11 = arith.constant 1.000000e+00 : f32
    %31 = vector.broadcast %cst_11 : f32 to vector<8x128xf32>
    %32 = arith.addf %31, %30 : vector<8x128xf32>
    %33 = tpu.reciprocal %32 {approx = true} : vector<8x128xf32> -> vector<8x128xf32>
    %cst_12 = arith.constant 1.000000e-07 : f32
    %cst_13 = arith.constant 0.99999988 : f32
    %34 = vector.broadcast %cst_12 : f32 to vector<8x128xf32>
    %35 = arith.maximumf %34, %33 : vector<8x128xf32>
    %36 = vector.broadcast %cst_13 : f32 to vector<8x128xf32>
    %37 = arith.minimumf %36, %35 : vector<8x128xf32>
    %c0_14 = arith.constant 0 : index
    %c0_15 = arith.constant 0 : index
    %38 = vector.load %arg5[%c0_14, %c0_15] : memref<8x128xf32, #tpu.memory_space<vmem>>, vector<8x128xf32>
    tpu.vector_store %arg5[%c0_14, %c0_15], %37 {strides = array<i32>} : memref<8x128xf32, #tpu.memory_space<vmem>>, vector<8x128xf32>,
    return
  }
  func.func @transform_0(%arg0: i32) -> (i32, i32) {
    %c0_i32 = arith.constant 0 : i32
    %c0_i32_0 = arith.constant 0 : i32
    return %arg0, %c0_i32 : i32, i32
  }
  func.func @transform_1(%arg0: i32) -> (i32, i32) {
    %c0_i32 = arith.constant 0 : i32
    %c0_i32_0 = arith.constant 0 : i32
    %c0_i32_1 = arith.constant 0 : i32
    return %c0_i32, %c0_i32_0 : i32, i32
  }
  func.func @transform_2(%arg0: i32) -> (i32, i32) {
    %c0_i32 = arith.constant 0 : i32
    %c0_i32_0 = arith.constant 0 : i32
    %c0_i32_1 = arith.constant 0 : i32
    return %c0_i32, %c0_i32_0 : i32, i32
  }
  func.func @transform_3(%arg0: i32) -> (i32, i32) {
    %c0_i32 = arith.constant 0 : i32
    %c0_i32_0 = arith.constant 0 : i32
    %c0_i32_1 = arith.constant 0 : i32
    return %c0_i32, %c0_i32_0 : i32, i32
  }
  func.func @transform_4(%arg0: i32) -> (i32, i32) {
    %c0_i32 = arith.constant 0 : i32
    %c0_i32_0 = arith.constant 0 : i32
    return %arg0, %c0_i32 : i32, i32
  }
}

</mosaic_0001>

<bundles_post_ra>
// kernel: tpu_custom_call.1
= control target key start
LH: loop header
LB: loop body
LE: loop exit
PB: predicated region body
PF: predicated region fallthrough
CT: control target
= control target key end

     0   :  { %9 = vsyncpa [#allocation3], 0  ;;  %s971_s0 = inlined_call_operand.hbm [shape: f32[8,128], index: 0, kind: input, shape index: {}]   ;;  %s972_s1 = inlined_call_operand.hbm [shape: bf16[128,128], index: 1, kind: input, shape index: {}]   ;;  %s973_s2 = inlined_call_operand.hbm [shape: bf16[128,128], index: 2, kind: input, shape index: {}]   ;;  %s974_s3 = inlined_call_operand.hbm [shape: bf16[128,128], index: 3, kind: input, shape index: {}]   ;;  %s975_s4 = inlined_call_operand.hbm [shape: f32[8,128], index: 4, kind: output, shape index: {}]  }
   0x1   :  { %10 = vsyncpa [#allocation6], 0 }
   0x2   :  { %11 = vsyncpa [#allocation9], 0  ;;  %s28_s17 = sshll.u32 %s972_s1, 4  ;;  %s29_s17 = int_to_ptr.hbm [resolvable:$true] %s28_s17 }
   0x3   :  { %12 = vsyncpa [#allocation4], 0  ;;  %s769_s18 = smov [#allocation5]   ;;  %s18_s22 = sshll.u32 %s971_s0, 4  ;;  %s19_s22 = int_to_ptr.hbm [resolvable:$true] %s18_s22 }
   0x4   :  { %s30_s19 = sshll.u32 %s769_s18, 4  ;;  %s770_s23 = smov 64   ;;  %s31_s19 = int_to_ptr.vmem [resolvable:$true] %s30_s19 }
   0x5   :  { %s771_s24 = smov 4   ;;  %s772_s25 = smov [#allocation2]  }
   0x6   :  { %36 = dma.hbm_to_vmem [thread:$0]  %s29_s17, 1024, %s31_s19, [#allocation6], %s770_s23, %s770_s23, %s771_s24  }
   0x7   :  { %s20_s26 = sshll.u32 %s772_s25, 4  ;;  %s41_s29 = sshll.u32 %s973_s2, 4  ;;  %s21_s26 = int_to_ptr.vmem [resolvable:$true] %s20_s26  ;;  %s42_s29 = int_to_ptr.hbm [resolvable:$true] %s41_s29 }
   0x8   :  { %23 = dma.hbm_to_vmem [thread:$0]  %s19_s22, 128, %s21_s26, [#allocation3]  }
   0x9   :  { %s54_s5 = sshll.u32 %s974_s3, 4  ;;  %s773_s6 = smov [#allocation7]   ;;  %s55_s5 = int_to_ptr.hbm [resolvable:$true] %s54_s5 }
   0xa   :  { %s43_s7 = sshll.u32 %s773_s6, 4  ;;  %s774_s0 = smov [#allocation8]   ;;  %s44_s7 = int_to_ptr.vmem [resolvable:$true] %s43_s7 }
   0xb   :  { %49 = dma.hbm_to_vmem [thread:$0]  %s42_s29, 1024, %s44_s7, [#allocation6], %s770_s23, %s770_s23, %s771_s24  }
   0xc   :  { %s56_s8 = sshll.u32 %s774_s0, 4  ;;  %s57_s8 = int_to_ptr.vmem [resolvable:$true] %s56_s8 }
   0xd   :  { %62 = dma.hbm_to_vmem [thread:$0]  %s55_s5, 1024, %s57_s8, [#allocation9], %s770_s23, %s770_s23, %s771_s24  }
   0xe   :  { %753 = dma.done.wait [#allocation3], 128  }
   0xf   :  { %754 = vsyncadd [#allocation3], 4294967168 }
  0x10   :  { %755 = dma.done.wait [#allocation6], 2048  }
  0x11   :  { %756 = vsyncadd [#allocation6], 4294965248 }
  0x12   :  { %757 = dma.done.wait [#allocation9], 1024  }
  0x13   :  { %758 = vsyncadd [#allocation9], 4294966272  ;;  %v814_v0 = vld [vmem:[#allocation7] sm:$0xf]  ;;  %v816_v1 = vld [vmem:[#allocation7] sm:$0xf0] }
  0x14   :  { %v818_v2 = vld [vmem:[#allocation7 + $0x8] sm:$0xf]  ;;  %v820_v3 = vld [vmem:[#allocation7 + $0x8] sm:$0xf0]  ;;  %v822_v4 = vld [vmem:[#allocation7 + $0x10] sm:$0xf] }
  0x15   :  { %v824_v5 = vld [vmem:[#allocation7 + $0x10] sm:$0xf0]  ;;  %v826_v6 = vld [vmem:[#allocation7 + $0x18] sm:$0xf]  ;;  %v828_v7 = vld [vmem:[#allocation7 + $0x18] sm:$0xf0] }
  0x16   :  { %v830_v8 = vld [vmem:[#allocation7 + $0x20] sm:$0xf]  ;;  %v832_v9 = vld [vmem:[#allocation7 + $0x20] sm:$0xf0]  ;;  %v834_v10 = vld [vmem:[#allocation7 + $0x28] sm:$0xf] }
  0x17   :  { %v836_v11 = vld [vmem:[#allocation7 + $0x28] sm:$0xf0]  ;;  %v838_v12 = vld [vmem:[#allocation7 + $0x30] sm:$0xf]  ;;  %v840_v13 = vld [vmem:[#allocation7 + $0x30] sm:$0xf0] }
  0x18   :  { %v842_v14 = vld [vmem:[#allocation7 + $0x38] sm:$0xf]  ;;  %v844_v15 = vld [vmem:[#allocation7 + $0x38] sm:$0xf0]  ;;  %v846_v16 = vld [vmem:[#allocation8] sm:$0xf] }
  0x19   :  { %v848_v17 = vld [vmem:[#allocation8] sm:$0xf0]  ;;  %v850_v18 = vld [vmem:[#allocation8 + $0x8] sm:$0xf]  ;;  %v852_v19 = vld [vmem:[#allocation8 + $0x8] sm:$0xf0] }
  0x1a   :  { %v854_v20 = vld [vmem:[#allocation8 + $0x10] sm:$0xf]  ;;  %v856_v21 = vld [vmem:[#allocation8 + $0x10] sm:$0xf0]  ;;  %v858_v22 = vld [vmem:[#allocation8 + $0x18] sm:$0xf] }
  0x1b   :  { %v860_v23 = vld [vmem:[#allocation8 + $0x18] sm:$0xf0]  ;;  %v862_v24 = vld [vmem:[#allocation8 + $0x20] sm:$0xf]  ;;  %v864_v25 = vld [vmem:[#allocation8 + $0x20] sm:$0xf0] }
  0x1c   :  { %v866_v26 = vld [vmem:[#allocation8 + $0x28] sm:$0xf]  ;;  %v868_v27 = vld [vmem:[#allocation8 + $0x28] sm:$0xf0]  ;;  %v870_v28 = vld [vmem:[#allocation8 + $0x30] sm:$0xf] }
  0x1d   :  { %v872_v29 = vld [vmem:[#allocation8 + $0x30] sm:$0xf0]  ;;  %v874_v30 = vld [vmem:[#allocation8 + $0x38] sm:$0xf]  ;;  %v876_v31 = vld [vmem:[#allocation8 + $0x38] sm:$0xf0] }
  0x1e   :  { %v878_v32 = vld [vmem:[#allocation5 + $0x38] sm:$0xff]  ;;  %v881_v33 = vld [vmem:[#allocation5 + $0x30] sm:$0xff]  ;;  %v884_v34 = vld [vmem:[#allocation5 + $0x28] sm:$0xff]  ;;  %vm135_vm0 = vcmask 1043456   ;;  %v910_v51 = vmov 0.0   ;;  %s912_s2 = smov 0  }
  0x1f   :  { %188 = vmatpush.bf16.xpose.msra.mxu0 %v878_v32  ;;  %v887_v35 = vld [vmem:[#allocation5 + $0x20] sm:$0xff]  ;;  %v890_v36 = vld [vmem:[#allocation5 + $0x18] sm:$0xff]  ;;  %v895_v38 = vld [vmem:[#allocation5 + $0x10] sm:$0xff] }
  0x20   :  { %v893_v37 = vld [vmem:[#allocation2] sm:$0xff]  ;;  %v900_v41 = vld [vmem:[#allocation5 + $0x8] sm:$0xff]  ;;  %v904_v44 = vld [vmem:[#allocation5] sm:$0xff] }
  0x21   :  { %v128_v39 = vpack.c.bf16 %v893_v37, %v893_v37 }
  0x23   :  { %v129_v40 = vunpack.c.l.bf16 %v128_v39 }
  0x25   :  { %v130_v42 = vsub.f32 %v893_v37, %v129_v40 }
  0x27   :  { %189 = vmatpush.bf16.xpose.msra.mxu0 %v881_v33  ;;  %v131_v43 = vpack.c.bf16 %v130_v42, %v130_v42 }
  0x29   :  { %v133_v45 = vunpack.c.l.b16 %v131_v43 }
  0x2b   :  { %v134_v46 = vpack.c.b16 %v133_v45, %v133_v45 }
  0x2d   :  { %v138_v47 = vsel %vm135_vm0, %v128_v39, %v134_v46 }
  0x2f   :  { %190 = vmatpush.bf16.xpose.msra.mxu0 %v884_v34 }
  0x37   :  { %191 = vmatpush.bf16.xpose.msra.mxu0 %v887_v35 }
  0x3f   :  { %192 = vmatpush.bf16.xpose.msra.mxu0 %v890_v36 }
  0x47   :  { %193 = vmatpush.bf16.xpose.msra.mxu0 %v895_v38 }
  0x4f   :  { %194 = vmatpush.bf16.xpose.msra.mxu0 %v900_v41 }
  0x57   :  { %195 = vmatpush.bf16.xpose.msra.mxu0 %v904_v44 }
  0x5e   :  { %196 = vmatmul.bf16.vlgmr.msra.gmra.mxu0 %v138_v47 }
  0xdb   :  { %v197_v48 = vpop.f32.mrf.mxu0 }
  0xe3   :  { %v199_v49 = vpop.f32.mrf.mxu0 }
  0xe4   :  { %v908_v50 = vadd.f32 %v199_v49, %v197_v48 }
  0xe5 LB: > { %v517_v52 = vor.u32 %v844_v15, %v842_v14  ;;  %v513_v53 = vor.u32 %v840_v13, %v838_v12  ;;  %v550_v54 = vor.u32 %v876_v31, %v874_v30  ;;  %v546_v55 = vor.u32 %v872_v29, %v870_v28  ;;  %s208_s2 = sadd.s32 1, %s767_s2   ;;  %s767_s2 = sphi %s912_s2, %s208_s2   ;;  %v763_v51 = vphi %v910_v51, %v976_v51  }
  0xe6   : > { %v509_v56 = vor.u32 %v836_v11, %v834_v10  ;;  %v210_v57 = vpack.c.bf16 %v763_v51, %v763_v51  ;;  %v505_v58 = vor.u32 %v832_v9, %v830_v8  ;;  %v501_v60 = vor.u32 %v828_v7, %v826_v6  ;;  %p205_p0 = scmp.ge.s32.totalorder %s208_s2, 5  }
  0xe7   : > { %269 = vmatpush.bf16.msra.mxu0 %v517_v52  ;;  %579 = vmatpush.bf16.msra.mxu2 %v550_v54  ;;  %v497_v62 = vor.u32 %v824_v5, %v822_v4  ;;  %v493_v39 = vor.u32 %v820_v3, %v818_v2  ;;  %v489_v42 = vor.u32 %v816_v1, %v814_v0  ;;  %s776_s3 = smov (%p205_p0), [#allocation10]   ;;  %s434_s12 = sshll.u32 (%p205_p0), %s975_s4, 4  ;;  %s435_s12 = int_to_ptr.hbm [resolvable:$true] %s434_s12 }
  0xe8   : > { %355 = vmatpush.bf16.msra.mxu1 %v550_v54  ;;  %v211_v59 = vunpack.c.l.bf16 %v210_v57  ;;  %v542_v46 = vor.u32 %v868_v27, %v866_v26  ;;  %v538_v47 = vor.u32 %v864_v25, %v862_v24  ;;  %v534_v48 = vor.u32 %v860_v23, %v858_v22  ;;  %s432_s9 = sshll.u32 (%p205_p0), %s776_s3, 4  ;;  %s433_s9 = int_to_ptr.vmem [resolvable:$true] %s432_s9 }
  0xe9   : > { %v530_v49 = vor.u32 %v856_v21, %v854_v20  ;;  %v522_v52 = vor.u32 %v848_v17, %v846_v16 }
  0xea   : > { %v212_v61 = vsub.f32 %v763_v51, %v211_v59  ;;  %v526_v51 = vor.u32 %v852_v19, %v850_v18 }
  0xeb   : > { %270 = vmatpush.bf16.msra.mxu0 %v513_v53  ;;  %580 = vmatpush.bf16.msra.mxu2 %v546_v55 }
  0xec   : > { %356 = vmatpush.bf16.msra.mxu1 %v546_v55  ;;  %v213_v63 = vpack.c.bf16 %v212_v61, %v212_v61  ;;  %v775_v61 = vmov 1.0|1.0  }
  0xee   : > { %v215_v40 = vunpack.c.l.b16 %v213_v63 }
  0xef   : > { %271 = vmatpush.bf16.msra.mxu0 %v509_v56  ;;  %581 = vmatpush.bf16.msra.mxu2 %v542_v46 }
  0xf0   : > { %v216_v43 = vpack.c.b16 %v215_v40, %v215_v40  ;;  %357 = vmatpush.bf16.msra.mxu1 %v542_v46 }
  0xf2   : > { %v219_v45 = vsel %vm135_vm0, %v210_v57, %v216_v43 }
  0xf3   : > { %272 = vmatpush.bf16.msra.mxu0 %v505_v58  ;;  %582 = vmatpush.bf16.msra.mxu2 %v538_v47 }
  0xf4   : > { %358 = vmatpush.bf16.msra.mxu1 %v538_v47 }
  0xf7   : > { %273 = vmatpush.bf16.msra.mxu0 %v501_v60  ;;  %583 = vmatpush.bf16.msra.mxu2 %v534_v48 }
  0xf8   : > { %359 = vmatpush.bf16.msra.mxu1 %v534_v48 }
  0xfb   : > { %274 = vmatpush.bf16.msra.mxu0 %v497_v62  ;;  %584 = vmatpush.bf16.msra.mxu2 %v530_v49 }
  0xfc   : > { %360 = vmatpush.bf16.msra.mxu1 %v530_v49 }
  0xff   : > { %275 = vmatpush.bf16.msra.mxu0 %v493_v39  ;;  %585 = vmatpush.bf16.msra.mxu2 %v526_v51 }
 0x100   : > { %361 = vmatpush.bf16.msra.mxu1 %v526_v51 }
 0x103   : > { %276 = vmatpush.bf16.msra.mxu0 %v489_v42  ;;  %586 = vmatpush.bf16.msra.mxu2 %v522_v52 }
 0x104   : > { %362 = vmatpush.bf16.msra.mxu1 %v522_v52 }
 0x106   : > { %277 = vmatmul.bf16.vlgmr.msra.gmra.mxu0 %v219_v45 }
 0x107   :  { %402 = vmatpush.bf16.msra.mxu0 (%p205_p0), %v878_v32 }
 0x10b   :  { %403 = vmatpush.bf16.msra.mxu0 (%p205_p0), %v881_v33 }
 0x10f   :  { %404 = vmatpush.bf16.msra.mxu0 (%p205_p0), %v884_v34 }
 0x113   :  { %405 = vmatpush.bf16.msra.mxu0 (%p205_p0), %v887_v35 }
 0x117   :  { %406 = vmatpush.bf16.msra.mxu0 (%p205_p0), %v890_v36 }
 0x11b   :  { %407 = vmatpush.bf16.msra.mxu0 (%p205_p0), %v895_v38 }
 0x11f   :  { %408 = vmatpush.bf16.msra.mxu0 (%p205_p0), %v900_v41 }
 0x123   :  { %409 = vmatpush.bf16.msra.mxu0 (%p205_p0), %v904_v44 }
 0x183   : > { %v278_v53 = vpop.f32.mrf.mxu0 }
 0x18b   : > { %v280_v54 = vpop.f32.mrf.mxu0 }
 0x18c   : > { %v283_v55 = vadd.f32 %v280_v54, %v278_v53 }
 0x18e   : > { %v284_v56 = vadd.f32 %v283_v55, %v908_v50 }
 0x190   : > { %v518_v57 = vclamps-f32 %v284_v56, 10.0 }
 0x192   : > { %v287_v58 = vmul.f32 0.5, %v518_v57 }
 0x194   : > { %611 = vtanh.f32 %v287_v58 }
 0x19a   : > { %v612_v59 = vpop.eup %611 }
 0x19b   : > { %vm289_vm1 = vcmp.lt.f32.partialorder %v612_v59, 0.0  ;;  %v291_v60 = vand.u32 2147483647, %v612_v59 }
 0x19c   : > { %vm551_vm2 = vmpackc.low %vm289_vm1, %vm289_vm1 }
 0x19d   : > { %552 = vmatmul.msk.bf16.vlgmr.msra.gmra.mxu2 %vm551_vm2, %v775_v61  ;;  %v292_v62 = vmax.f32 %v291_v60, 1e-07 }
 0x19f   : > { %613 = vlog2.f32 %v292_v62 }
 0x1a5   : > { %v614_v63 = vpop.eup %613 }
 0x1a6   : > { %v294_v39 = vmul.f32 0.6931472, %v614_v63 }
 0x1a8   : > { %v295_v40 = vpack.c.bf16 %v294_v39, %v294_v39 }
 0x1aa   : > { %v296_v42 = vunpack.c.l.bf16 %v295_v40 }
 0x1ac   : > { %v297_v43 = vsub.f32 %v294_v39, %v296_v42 }
 0x1ae   : > { %v298_v45 = vpack.c.bf16 %v297_v43, %v297_v43 }
 0x1b0   : > { %v301_v46 = vunpack.c.l.b16 %v298_v45 }
 0x1b2   : > { %v302_v47 = vpack.c.b16 %v301_v46, %v301_v46 }
 0x1b4   : > { %v305_v48 = vsel %vm135_vm0, %v295_v40, %v302_v47 }
 0x1b5   : > { %363 = vmatmul.bf16.vlgmr.msra.gmra.mxu1 %v305_v48 }
 0x220   : > { %v369_v49 = vpop.f32.mrf.mxu2 }
 0x221   : > { %v374_v52 = vmul.f32 0.5, %v369_v49 }
 0x223   : > { %v375_v54 = vfloor.f32 %v374_v52 }
 0x225   : > { %v376_v55 = vmul.f32 2.0, %v375_v54 }
 0x227   : > { %v377_v58 = vsub.f32 %v369_v49, %v376_v55 }
 0x228   : > { %v371_v51 = vpop.f32.mrf.mxu2 }
 0x229   : > { %v378_v60 = vmul.f32 2.0, %v377_v58 }
 0x22b   : > { %v379_v61 = vsub.f32 1.0, %v378_v60 }
 0x232   : > { %v364_v53 = vpop.f32.mrf.mxu1 }
 0x23a   : > { %v366_v56 = vpop.f32.mrf.mxu1 }
 0x23b   : > { %v373_v57 = vadd.f32 %v366_v56, %v364_v53 }
 0x23d   : > { %v380_v59 = vmul.f32 1.442695, %v373_v57 }
 0x23f   : > { %615 = vpow2.f32 %v380_v59 }
 0x245   : > { %v616_v62 = vpop.eup %615 }
 0x246   : > { %v382_v63 = vmul.f32 %v616_v62, %v379_v61 }
 0x248   : > { %v553_v39 = vclamps-f32 %v382_v63, 0.9999999 }
 0x24a   : > { %v386_v42 = vsub.f32 1.0, %v553_v39  ;;  %v385_v40 = vadd.f32 1.0, %v553_v39 }
 0x24c   : > { %617 = vrcp.f32 %v386_v42 }
 0x252   : > { %v618_v43 = vpop.eup %617 }
 0x253   : > { %v388_v45 = vmul.f32 %v618_v43, %v385_v40 }
 0x255   : > { %619 = vlog2.f32 %v388_v45 }
 0x25a   :  { %207 = sbr.rel (!%p205_p0) target bundleno = 229 (0xe5), region = 59 }
 0x25b   : > { %v620_v46 = vpop.eup %619 }
 0x25c   : > { %v390_v47 = vmul.f32 0.6931472, %v620_v46  }
 0x25e   : > { %v976_v51 = vmov %v390_v47  ;;  %v391_v48 = vpack.c.bf16 (%p205_p0), %v390_v47, %v390_v47 }
 0x260   :  { %v392_v49 = vunpack.c.l.bf16 %v391_v48 }
 0x262   :  { %v393_v51 = vsub.f32 %v390_v47, %v392_v49 }
 0x264   :  { %v394_v52 = vpack.c.bf16 %v393_v51, %v393_v51 }
 0x266   :  { %v396_v53 = vunpack.c.l.b16 %v394_v52 }
 0x268   :  { %v397_v54 = vpack.c.b16 %v396_v53, %v396_v53 }
 0x26a   :  { %v400_v0 = vsel %vm135_vm0, %v391_v48, %v397_v54 }
 0x26b   :  { %410 = vmatmul.bf16.vlgmr.msra.gmra.mxu0 %v400_v0 }
 0x2e8   :  { %v411_v1 = vpop.f32.mrf.mxu0 }
 0x2f0   :  { %v413_v2 = vpop.f32.mrf.mxu0 }
 0x2f1   :  { %v416_v3 = vadd.f32 %v413_v2, %v411_v1 }
 0x2f3   :  { %v417_v4 = vadd.f32 %v416_v3, %v893_v37 }
 0x2f5   :  { %v554_v5 = vclamps-f32 %v417_v4, 30.0 }
 0x2f7   :  { %v420_v6 = vmul.f32 1.442695, %v554_v5 }
 0x2f9   :  { %621 = vpow2.f32 %v420_v6 }
 0x2ff   :  { %v622_v7 = vpop.eup %621 }
 0x300   :  { %v422_v8 = vadd.f32 1.0, %v622_v7 }
 0x302   :  { %623 = vrcp.f32 %v422_v8 }
 0x308   :  { %v624_v9 = vpop.eup %623 }
 0x309   :  { %v424_v10 = vmax.f32 %v624_v9, 1e-07 }
 0x30b   :  { %v425_v11 = vmin.f32 %v424_v10, 0.9999999 }
 0x30d   :  { %426 = vst [vmem:[#allocation10] sm:$0xff] %v425_v11 }
 0x30e   :  { %437 = dma.vmem_to_hbm [thread:$0]  %s433_s9, 128, %s435_s12, [#allocation4]  }
 0x30f   :  { %759 = dma.done.wait [#allocation4], 128  }
 0x310   :  { %760 = vsyncadd [#allocation4], 4294967168 }
 0x311   :  { %442 = vsyncpa [#allocation3], 1 }
 0x312   :  { %443 = vsyncpa [#allocation6], 1 }
 0x313   :  { %444 = vsyncpa [#allocation9], 1 }
 0x314   :  { %445 = vsyncpa [#allocation4], 1 }

// kernel: tpu_custom_call.1
= control target key start
LH: loop header
LB: loop body
LE: loop exit
PB: predicated region body
PF: predicated region fallthrough
CT: control target
= control target key end

     0   :  { %9 = vsyncpa [#allocation3], 0  ;;  %s971_s0 = inlined_call_operand.hbm [shape: f32[8,128], index: 0, kind: input, shape index: {}]   ;;  %s972_s1 = inlined_call_operand.hbm [shape: bf16[128,128], index: 1, kind: input, shape index: {}]   ;;  %s973_s2 = inlined_call_operand.hbm [shape: bf16[128,128], index: 2, kind: input, shape index: {}]   ;;  %s974_s3 = inlined_call_operand.hbm [shape: bf16[128,128], index: 3, kind: input, shape index: {}]   ;;  %s975_s4 = inlined_call_operand.hbm [shape: f32[8,128], index: 4, kind: output, shape index: {}]  }
   0x1   :  { %10 = vsyncpa [#allocation6], 0 }
   0x2   :  { %11 = vsyncpa [#allocation9], 0  ;;  %s28_s17 = sshll.u32 %s972_s1, 4  ;;  %s29_s17 = int_to_ptr.hbm [resolvable:$true] %s28_s17 }
   0x3   :  { %12 = vsyncpa [#allocation4], 0  ;;  %s769_s18 = smov [#allocation5]   ;;  %s18_s22 = sshll.u32 %s971_s0, 4  ;;  %s19_s22 = int_to_ptr.hbm [resolvable:$true] %s18_s22 }
   0x4   :  { %s30_s19 = sshll.u32 %s769_s18, 4  ;;  %s770_s23 = smov 64   ;;  %s31_s19 = int_to_ptr.vmem [resolvable:$true] %s30_s19 }
   0x5   :  { %s771_s24 = smov 4   ;;  %s772_s25 = smov [#allocation2]  }
   0x6   :  { %36 = dma.hbm_to_vmem [thread:$0]  %s29_s17, 1024, %s31_s19, [#allocation6], %s770_s23, %s770_s23, %s771_s24  }
   0x7   :  { %s20_s26 = sshll.u32 %s772_s25, 4  ;;  %s41_s29 = sshll.u32 %s973_s2, 4  ;;  %s21_s26 = int_to_ptr.vmem [resolvable:$true] %s20_s26  ;;  %s42_s29 = int_to_ptr.hbm [resolvable:$true] %s41_s29 }
   0x8   :  { %23 = dma.hbm_to_vmem [thread:$0]  %s19_s22, 128, %s21_s26, [#allocation3]  }
   0x9   :  { %s54_s5 = sshll.u32 %s974_s3, 4  ;;  %s773_s6 = smov [#allocation7]   ;;  %s55_s5 = int_to_ptr.hbm [resolvable:$true] %s54_s5 }
   0xa   :  { %s43_s7 = sshll.u32 %s773_s6, 4  ;;  %s774_s0 = smov [#allocation8]   ;;  %s44_s7 = int_to_ptr.vmem [resolvable:$true] %s43_s7 }
   0xb   :  { %49 = dma.hbm_to_vmem [thread:$0]  %s42_s29, 1024, %s44_s7, [#allocation6], %s770_s23, %s770_s23, %s771_s24  }
   0xc   :  { %s56_s8 = sshll.u32 %s774_s0, 4  ;;  %s57_s8 = int_to_ptr.vmem [resolvable:$true] %s56_s8 }
   0xd   :  { %62 = dma.hbm_to_vmem [thread:$0]  %s55_s5, 1024, %s57_s8, [#allocation9], %s770_s23, %s770_s23, %s771_s24  }
   0xe   :  { %753 = dma.done.wait [#allocation3], 128  }
   0xf   :  { %754 = vsyncadd [#allocation3], 4294967168 }
  0x10   :  { %755 = dma.done.wait [#allocation6], 2048  }
  0x11   :  { %756 = vsyncadd [#allocation6], 4294965248 }
  0x12   :  { %757 = dma.done.wait [#allocation9], 1024  }
  0x13   :  { %758 = vsyncadd [#allocation9], 4294966272  ;;  %v814_v0 = vld [vmem:[#allocation7] sm:$0xf]  ;;  %v816_v1 = vld [vmem:[#allocation7] sm:$0xf0] }
  0x14   :  { %v818_v2 = vld [vmem:[#allocation7 + $0x8] sm:$0xf]  ;;  %v820_v3 = vld [vmem:[#allocation7 + $0x8] sm:$0xf0]  ;;  %v822_v4 = vld [vmem:[#allocation7 + $0x10] sm:$0xf] }
  0x15   :  { %v824_v5 = vld [vmem:[#allocation7 + $0x10] sm:$0xf0]  ;;  %v826_v6 = vld [vmem:[#allocation7 + $0x18] sm:$0xf]  ;;  %v828_v7 = vld [vmem:[#allocation7 + $0x18] sm:$0xf0] }
  0x16   :  { %v830_v8 = vld [vmem:[#allocation7 + $0x20] sm:$0xf]  ;;  %v832_v9 = vld [vmem:[#allocation7 + $0x20] sm:$0xf0]  ;;  %v834_v10 = vld [vmem:[#allocation7 + $0x28] sm:$0xf] }
  0x17   :  { %v836_v11 = vld [vmem:[#allocation7 + $0x28] sm:$0xf0]  ;;  %v838_v12 = vld [vmem:[#allocation7 + $0x30] sm:$0xf]  ;;  %v840_v13 = vld [vmem:[#allocation7 + $0x30] sm:$0xf0] }
  0x18   :  { %v842_v14 = vld [vmem:[#allocation7 + $0x38] sm:$0xf]  ;;  %v844_v15 = vld [vmem:[#allocation7 + $0x38] sm:$0xf0]  ;;  %v846_v16 = vld [vmem:[#allocation8] sm:$0xf] }
  0x19   :  { %v848_v17 = vld [vmem:[#allocation8] sm:$0xf0]  ;;  %v850_v18 = vld [vmem:[#allocation8 + $0x8] sm:$0xf]  ;;  %v852_v19 = vld [vmem:[#allocation8 + $0x8] sm:$0xf0] }
  0x1a   :  { %v854_v20 = vld [vmem:[#allocation8 + $0x10] sm:$0xf]  ;;  %v856_v21 = vld [vmem:[#allocation8 + $0x10] sm:$0xf0]  ;;  %v858_v22 = vld [vmem:[#allocation8 + $0x18] sm:$0xf] }
  0x1b   :  { %v860_v23 = vld [vmem:[#allocation8 + $0x18] sm:$0xf0]  ;;  %v862_v24 = vld [vmem:[#allocation8 + $0x20] sm:$0xf]  ;;  %v864_v25 = vld [vmem:[#allocation8 + $0x20] sm:$0xf0] }
  0x1c   :  { %v866_v26 = vld [vmem:[#allocation8 + $0x28] sm:$0xf]  ;;  %v868_v27 = vld [vmem:[#allocation8 + $0x28] sm:$0xf0]  ;;  %v870_v28 = vld [vmem:[#allocation8 + $0x30] sm:$0xf] }
  0x1d   :  { %v872_v29 = vld [vmem:[#allocation8 + $0x30] sm:$0xf0]  ;;  %v874_v30 = vld [vmem:[#allocation8 + $0x38] sm:$0xf]  ;;  %v876_v31 = vld [vmem:[#allocation8 + $0x38] sm:$0xf0] }
  0x1e   :  { %v878_v32 = vld [vmem:[#allocation5 + $0x38] sm:$0xff]  ;;  %v881_v33 = vld [vmem:[#allocation5 + $0x30] sm:$0xff]  ;;  %v884_v34 = vld [vmem:[#allocation5 + $0x28] sm:$0xff]  ;;  %vm135_vm0 = vcmask 1043456   ;;  %v910_v51 = vmov 0.0   ;;  %s912_s2 = smov 0  }
  0x1f   :  { %188 = vmatpush.bf16.xpose.msra.mxu0 %v878_v32  ;;  %v887_v35 = vld [vmem:[#allocation5 + $0x20] sm:$0xff]  ;;  %v890_v36 = vld [vmem:[#allocation5 + $0x18] sm:$0xff]  ;;  %v895_v38 = vld [vmem:[#allocation5 + $0x10] sm:$0xff] }
  0x20   :  { %v893_v37 = vld [vmem:[#allocation2] sm:$0xff]  ;;  %v900_v41 = vld [vmem:[#allocation5 + $0x8] sm:$0xff]  ;;  %v904_v44 = vld [vmem:[#allocation5] sm:$0xff] }
  0x21   :  { %v128_v39 = vpack.c.bf16 %v893_v37, %v893_v37 }
  0x23   :  { %v129_v40 = vunpack.c.l.bf16 %v128_v39 }
  0x25   :  { %v130_v42 = vsub.f32 %v893_v37, %v129_v40 }
  0x27   :  { %189 = vmatpush.bf16.xpose.msra.mxu0 %v881_v33  ;;  %v131_v43 = vpack.c.bf16 %v130_v42, %v130_v42 }
  0x29   :  { %v133_v45 = vunpack.c.l.b16 %v131_v43 }
  0x2b   :  { %v134_v46 = vpack.c.b16 %v133_v45, %v133_v45 }
  0x2d   :  { %v138_v47 = vsel %vm135_vm0, %v128_v39, %v134_v46 }
  0x2f   :  { %190 = vmatpush.bf16.xpose.msra.mxu0 %v884_v34 }
  0x37   :  { %191 = vmatpush.bf16.xpose.msra.mxu0 %v887_v35 }
  0x3f   :  { %192 = vmatpush.bf16.xpose.msra.mxu0 %v890_v36 }
  0x47   :  { %193 = vmatpush.bf16.xpose.msra.mxu0 %v895_v38 }
  0x4f   :  { %194 = vmatpush.bf16.xpose.msra.mxu0 %v900_v41 }
  0x57   :  { %195 = vmatpush.bf16.xpose.msra.mxu0 %v904_v44 }
  0x5e   :  { %196 = vmatmul.bf16.vlgmr.msra.gmra.mxu0 %v138_v47 }
  0xdb   :  { %v197_v48 = vpop.f32.mrf.mxu0 }
  0xe3   :  { %v199_v49 = vpop.f32.mrf.mxu0 }
  0xe4   :  { %v908_v50 = vadd.f32 %v199_v49, %v197_v48 }
  0xe5 LB: > { %v517_v52 = vor.u32 %v844_v15, %v842_v14  ;;  %v513_v53 = vor.u32 %v840_v13, %v838_v12  ;;  %v550_v54 = vor.u32 %v876_v31, %v874_v30  ;;  %v546_v55 = vor.u32 %v872_v29, %v870_v28  ;;  %s208_s2 = sadd.s32 1, %s767_s2   ;;  %s767_s2 = sphi %s912_s2, %s208_s2   ;;  %v763_v51 = vphi %v910_v51, %v976_v51  }
  0xe6   : > { %v509_v56 = vor.u32 %v836_v11, %v834_v10  ;;  %v210_v57 = vpack.c.bf16 %v763_v51, %v763_v51  ;;  %v505_v58 = vor.u32 %v832_v9, %v830_v8  ;;  %v501_v60 = vor.u32 %v828_v7, %v826_v6  ;;  %p205_p0 = scmp.ge.s32.totalorder %s208_s2, 5  }
  0xe7   : > { %269 = vmatpush.bf16.msra.mxu0 %v517_v52  ;;  %579 = vmatpush.bf16.msra.mxu2 %v550_v54  ;;  %v497_v62 = vor.u32 %v824_v5, %v822_v4  ;;  %v493_v39 = vor.u32 %v820_v3, %v818_v2  ;;  %v489_v42 = vor.u32 %v816_v1, %v814_v0  ;;  %s776_s3 = smov (%p205_p0), [#allocation10]   ;;  %s434_s12 = sshll.u32 (%p205_p0), %s975_s4, 4  ;;  %s435_s12 = int_to_ptr.hbm [resolvable:$true] %s434_s12 }
  0xe8   : > { %355 = vmatpush.bf16.msra.mxu1 %v550_v54  ;;  %v211_v59 = vunpack.c.l.bf16 %v210_v57  ;;  %v542_v46 = vor.u32 %v868_v27, %v866_v26  ;;  %v538_v47 = vor.u32 %v864_v25, %v862_v24  ;;  %v534_v48 = vor.u32 %v860_v23, %v858_v22  ;;  %s432_s9 = sshll.u32 (%p205_p0), %s776_s3, 4  ;;  %s433_s9 = int_to_ptr.vmem [resolvable:$true] %s432_s9 }
  0xe9   : > { %v530_v49 = vor.u32 %v856_v21, %v854_v20  ;;  %v522_v52 = vor.u32 %v848_v17, %v846_v16 }
  0xea   : > { %v212_v61 = vsub.f32 %v763_v51, %v211_v59  ;;  %v526_v51 = vor.u32 %v852_v19, %v850_v18 }
  0xeb   : > { %270 = vmatpush.bf16.msra.mxu0 %v513_v53  ;;  %580 = vmatpush.bf16.msra.mxu2 %v546_v55 }
  0xec   : > { %356 = vmatpush.bf16.msra.mxu1 %v546_v55  ;;  %v213_v63 = vpack.c.bf16 %v212_v61, %v212_v61  ;;  %v775_v61 = vmov 1.0|1.0  }
  0xee   : > { %v215_v40 = vunpack.c.l.b16 %v213_v63 }
  0xef   : > { %271 = vmatpush.bf16.msra.mxu0 %v509_v56  ;;  %581 = vmatpush.bf16.msra.mxu2 %v542_v46 }
  0xf0   : > { %v216_v43 = vpack.c.b16 %v215_v40, %v215_v40  ;;  %357 = vmatpush.bf16.msra.mxu1 %v542_v46 }
  0xf2   : > { %v219_v45 = vsel %vm135_vm0, %v210_v57, %v216_v43 }
  0xf3   : > { %272 = vmatpush.bf16.msra.mxu0 %v505_v58  ;;  %582 = vmatpush.bf16.msra.mxu2 %v538_v47 }
  0xf4   : > { %358 = vmatpush.bf16.msra.mxu1 %v538_v47 }
  0xf7   : > { %273 = vmatpush.bf16.msra.mxu0 %v501_v60  ;;  %583 = vmatpush.bf16.msra.mxu2 %v534_v48 }
  0xf8   : > { %359 = vmatpush.bf16.msra.mxu1 %v534_v48 }
  0xfb   : > { %274 = vmatpush.bf16.msra.mxu0 %v497_v62  ;;  %584 = vmatpush.bf16.msra.mxu2 %v530_v49 }
  0xfc   : > { %360 = vmatpush.bf16.msra.mxu1 %v530_v49 }
  0xff   : > { %275 = vmatpush.bf16.msra.mxu0 %v493_v39  ;;  %585 = vmatpush.bf16.msra.mxu2 %v526_v51 }
 0x100   : > { %361 = vmatpush.bf16.msra.mxu1 %v526_v51 }
 0x103   : > { %276 = vmatpush.bf16.msra.mxu0 %v489_v42  ;;  %586 = vmatpush.bf16.msra.mxu2 %v522_v52 }
 0x104   : > { %362 = vmatpush.bf16.msra.mxu1 %v522_v52 }
 0x106   : > { %277 = vmatmul.bf16.vlgmr.msra.gmra.mxu0 %v219_v45 }
 0x107   :  { %402 = vmatpush.bf16.msra.mxu0 (%p205_p0), %v878_v32 }
 0x10b   :  { %403 = vmatpush.bf16.msra.mxu0 (%p205_p0), %v881_v33 }
 0x10f   :  { %404 = vmatpush.bf16.msra.mxu0 (%p205_p0), %v884_v34 }
 0x113   :  { %405 = vmatpush.bf16.msra.mxu0 (%p205_p0), %v887_v35 }
 0x117   :  { %406 = vmatpush.bf16.msra.mxu0 (%p205_p0), %v890_v36 }
 0x11b   :  { %407 = vmatpush.bf16.msra.mxu0 (%p205_p0), %v895_v38 }
 0x11f   :  { %408 = vmatpush.bf16.msra.mxu0 (%p205_p0), %v900_v41 }
 0x123   :  { %409 = vmatpush.bf16.msra.mxu0 (%p205_p0), %v904_v44 }
 0x183   : > { %v278_v53 = vpop.f32.mrf.mxu0 }
 0x18b   : > { %v280_v54 = vpop.f32.mrf.mxu0 }
 0x18c   : > { %v283_v55 = vadd.f32 %v280_v54, %v278_v53 }
 0x18e   : > { %v284_v56 = vadd.f32 %v283_v55, %v908_v50 }
 0x190   : > { %v518_v57 = vclamps-f32 %v284_v56, 10.0 }
 0x192   : > { %v287_v58 = vmul.f32 0.5, %v518_v57 }
 0x194   : > { %611 = vtanh.f32 %v287_v58 }
 0x19a   : > { %v612_v59 = vpop.eup %611 }
 0x19b   : > { %vm289_vm1 = vcmp.lt.f32.partialorder %v612_v59, 0.0  ;;  %v291_v60 = vand.u32 2147483647, %v612_v59 }
 0x19c   : > { %vm551_vm2 = vmpackc.low %vm289_vm1, %vm289_vm1 }
 0x19d   : > { %552 = vmatmul.msk.bf16.vlgmr.msra.gmra.mxu2 %vm551_vm2, %v775_v61  ;;  %v292_v62 = vmax.f32 %v291_v60, 1e-07 }
 0x19f   : > { %613 = vlog2.f32 %v292_v62 }
 0x1a5   : > { %v614_v63 = vpop.eup %613 }
 0x1a6   : > { %v294_v39 = vmul.f32 0.6931472, %v614_v63 }
 0x1a8   : > { %v295_v40 = vpack.c.bf16 %v294_v39, %v294_v39 }
 0x1aa   : > { %v296_v42 = vunpack.c.l.bf16 %v295_v40 }
 0x1ac   : > { %v297_v43 = vsub.f32 %v294_v39, %v296_v42 }
 0x1ae   : > { %v298_v45 = vpack.c.bf16 %v297_v43, %v297_v43 }
 0x1b0   : > { %v301_v46 = vunpack.c.l.b16 %v298_v45 }
 0x1b2   : > { %v302_v47 = vpack.c.b16 %v301_v46, %v301_v46 }
 0x1b4   : > { %v305_v48 = vsel %vm135_vm0, %v295_v40, %v302_v47 }
 0x1b5   : > { %363 = vmatmul.bf16.vlgmr.msra.gmra.mxu1 %v305_v48 }
 0x220   : > { %v369_v49 = vpop.f32.mrf.mxu2 }
 0x221   : > { %v374_v52 = vmul.f32 0.5, %v369_v49 }
 0x223   : > { %v375_v54 = vfloor.f32 %v374_v52 }
 0x225   : > { %v376_v55 = vmul.f32 2.0, %v375_v54 }
 0x227   : > { %v377_v58 = vsub.f32 %v369_v49, %v376_v55 }
 0x228   : > { %v371_v51 = vpop.f32.mrf.mxu2 }
 0x229   : > { %v378_v60 = vmul.f32 2.0, %v377_v58 }
 0x22b   : > { %v379_v61 = vsub.f32 1.0, %v378_v60 }
 0x232   : > { %v364_v53 = vpop.f32.mrf.mxu1 }
 0x23a   : > { %v366_v56 = vpop.f32.mrf.mxu1 }
 0x23b   : > { %v373_v57 = vadd.f32 %v366_v56, %v364_v53 }
 0x23d   : > { %v380_v59 = vmul.f32 1.442695, %v373_v57 }
 0x23f   : > { %615 = vpow2.f32 %v380_v59 }
 0x245   : > { %v616_v62 = vpop.eup %615 }
 0x246   : > { %v382_v63 = vmul.f32 %v616_v62, %v379_v61 }
 0x248   : > { %v553_v39 = vclamps-f32 %v382_v63, 0.9999999 }
 0x24a   : > { %v386_v42 = vsub.f32 1.0, %v553_v39  ;;  %v385_v40 = vadd.f32 1.0, %v553_v39 }
 0x24c   : > { %617 = vrcp.f32 %v386_v42 }
 0x252   : > { %v618_v43 = vpop.eup %617 }
 0x253   : > { %v388_v45 = vmul.f32 %v618_v43, %v385_v40 }
 0x255   : > { %619 = vlog2.f32 %v388_v45 }
 0x25a   :  { %207 = sbr.rel (!%p205_p0) target bundleno = 229 (0xe5), region = 59 }
 0x25b   : > { %v620_v46 = vpop.eup %619 }
 0x25c   : > { %v390_v47 = vmul.f32 0.6931472, %v620_v46  }
 0x25e   : > { %v976_v51 = vmov %v390_v47  ;;  %v391_v48 = vpack.c.bf16 (%p205_p0), %v390_v47, %v390_v47 }
 0x260   :  { %v392_v49 = vunpack.c.l.bf16 %v391_v48 }
 0x262   :  { %v393_v51 = vsub.f32 %v390_v47, %v392_v49 }
 0x264   :  { %v394_v52 = vpack.c.bf16 %v393_v51, %v393_v51 }
 0x266   :  { %v396_v53 = vunpack.c.l.b16 %v394_v52 }
 0x268   :  { %v397_v54 = vpack.c.b16 %v396_v53, %v396_v53 }
 0x26a   :  { %v400_v0 = vsel %vm135_vm0, %v391_v48, %v397_v54 }
 0x26b   :  { %410 = vmatmul.bf16.vlgmr.msra.gmra.mxu0 %v400_v0 }
 0x2e8   :  { %v411_v1 = vpop.f32.mrf.mxu0 }
 0x2f0   :  { %v413_v2 = vpop.f32.mrf.mxu0 }
 0x2f1   :  { %v416_v3 = vadd.f32 %v413_v2, %v411_v1 }
 0x2f3   :  { %v417_v4 = vadd.f32 %v416_v3, %v893_v37 }
 0x2f5   :  { %v554_v5 = vclamps-f32 %v417_v4, 30.0 }
 0x2f7   :  { %v420_v6 = vmul.f32 1.442695, %v554_v5 }
 0x2f9   :  { %621 = vpow2.f32 %v420_v6 }
 0x2ff   :  { %v622_v7 = vpop.eup %621 }
 0x300   :  { %v422_v8 = vadd.f32 1.0, %v622_v7 }
 0x302   :  { %623 = vrcp.f32 %v422_v8 }
 0x308   :  { %v624_v9 = vpop.eup %623 }
 0x309   :  { %v424_v10 = vmax.f32 %v624_v9, 1e-07 }
 0x30b   :  { %v425_v11 = vmin.f32 %v424_v10, 0.9999999 }
 0x30d   :  { %426 = vst [vmem:[#allocation10] sm:$0xff] %v425_v11 }
 0x30e   :  { %437 = dma.vmem_to_hbm [thread:$0]  %s433_s9, 128, %s435_s12, [#allocation4]  }
 0x30f   :  { %759 = dma.done.wait [#allocation4], 128  }
 0x310   :  { %760 = vsyncadd [#allocation4], 4294967168 }
 0x311   :  { %442 = vsyncpa [#allocation3], 1 }
 0x312   :  { %443 = vsyncpa [#allocation6], 1 }
 0x313   :  { %444 = vsyncpa [#allocation9], 1 }
 0x314   :  { %445 = vsyncpa [#allocation4], 1 }

</bundles_post_ra>
